<compile_context>
chip_gen: v7x
topology: tpu7x:2x2x1
jax: 0.10.0
libtpu: 0.0.40
codegen_flags: <defaults>
</compile_context>

<pallas_src>
import functools
import math

import jax
import jax.numpy as jnp
from jax import lax
from jax.experimental import pallas as pl
from jax.experimental.pallas import tpu as pltpu


def _label_smoothing_kernel(x_ref, tgt_ref, td_ref, loss_ref, *,
                            size, n_rows, padding_idx,
                            confidence, smooth_val, log_conf, log_smooth):
    """One grid step processes a (tile_n, V_pad) tile of rows.

    Builds the smoothed true distribution for the tile, writes it out, and
    writes the tile's KL contribution folded into an (8, 128) partial block.
    """
    i = pl.program_id(0)
    tile_n, v_pad = x_ref.shape

    x = x_ref[...].astype(jnp.float32)     # (tile_n, V_pad) log-probs (native dtype in HBM)
    tgt = tgt_ref[...]                     # (tile_n, 1) int32 labels

    col = lax.broadcasted_iota(jnp.int32, (tile_n, v_pad), 1)
    is_target = col == tgt

    # true_dist.fill_(smoothing/(size-2)); scatter_(1, target, confidence)
    td = jnp.where(is_target, jnp.float32(confidence), jnp.float32(smooth_val))
    # log(true_dist) takes only two nonzero values -> compile-time constants.
    log_td = jnp.where(is_target, jnp.float32(log_conf), jnp.float32(log_smooth))

    # true_dist[:, padding_idx] = 0
    keep = col != padding_idx
    # zero rows whose target == padding_idx (index_fill_)
    keep = keep & (tgt != padding_idx)
    # zero lane-padding columns beyond the real vocab (wrapper padded V to 128k)
    if v_pad != size:
        keep = keep & (col < size)
    # zero rows beyond the real batch (ragged last tile)
    if n_rows % tile_n != 0:
        row = lax.broadcasted_iota(jnp.int32, (tile_n, v_pad), 0)
        keep = keep & ((i * tile_n + row) < n_rows)

    td = jnp.where(keep, td, jnp.float32(0.0))
    td_ref[...] = td.astype(td_ref.dtype)

    # KLDivLoss (log-input target convention): y * (log y - x), with 0*log0 := 0.
    kl = jnp.where(td > 0, td * (log_td - x), jnp.float32(0.0))

    # Fold the (tile_n, V_pad) contributions into an (8, 128) vreg-shaped partial:
    #  rows -> 8 sublanes: free reshape (splits the sublane-group axis) + VPU adds.
    acc = kl.reshape(tile_n // 8, 8, v_pad).sum(axis=0)           # (8, V_pad)
    #  lane groups -> 128 lanes: lane-aligned static slices, no relayout.
    part = acc[:, 0:128]
    for k in range(1, v_pad // 128):
        part = part + acc[:, k * 128:(k + 1) * 128]
    loss_ref[...] = part


def label_smoothing_loss(x, target, *, size, padding_idx, smoothing=0.0, tile_n=None):
    """Pallas implementation of LabelSmoothing.forward.

    x:      (N, size) float log-probabilities (any float dtype; no wrapper upcast)
    target: (N,)      int class indices
    returns (loss_scalar_f32, true_dist) matching the PyTorch module.
    """
    N, V = x.shape
    assert V == size

    # Lane-dense vocab axis: pad V up to a multiple of 128 (masked to 0 in-kernel).
    v_pad = ((V + 127) // 128) * 128
    if v_pad != V:
        x = jnp.pad(x, ((0, 0), (0, v_pad - V)))

    target2d = target.reshape(N, 1).astype(jnp.int32)

    # Per-generation VMEM sizing (v7x has 64 MiB, v5e/v6e 128 MiB per core).
    try:
        info = pltpu.get_tpu_info()
        vmem_phys = int(getattr(info, "vmem_capacity_bytes", 64 * 1024 * 1024))
    except Exception:
        vmem_phys = 64 * 1024 * 1024
    tile_budget = int(vmem_phys * 0.35)                   # double-buffered x+td tiles
    vmem_limit = min(int(vmem_phys * 0.6), 100 * 1024 * 1024)

    x_bytes = jnp.dtype(x.dtype).itemsize
    td_bytes = x_bytes                                    # true_dist in x's dtype (clone semantics)
    if tile_n is None:
        per_row = 2 * (v_pad * (x_bytes + td_bytes) + 4)  # 2 buffers x (x + td (+ tgt)) per row
        tile_n = max(8, min(1024, (tile_budget // per_row) // 8 * 8))
    tile_n = max(8, (min(tile_n, ((N + 7) // 8) * 8) // 8) * 8)

    num_tiles = -(-N // tile_n)

    confidence = 1.0 - float(smoothing)
    smooth_val = float(smoothing) / (size - 2)
    log_conf = math.log(confidence) if confidence > 0.0 else 0.0
    log_smooth = math.log(smooth_val) if smooth_val > 0.0 else 0.0

    kernel = functools.partial(
        _label_smoothing_kernel,
        size=size, n_rows=N, padding_idx=padding_idx,
        confidence=confidence, smooth_val=smooth_val,
        log_conf=log_conf, log_smooth=log_smooth)

    true_dist, loss_parts = pl.pallas_call(
        kernel,
        grid=(num_tiles,),
        in_specs=[
            pl.BlockSpec((tile_n, v_pad), lambda i: (i, 0)),   # x tile (native dtype)
            pl.BlockSpec((tile_n, 1), lambda i: (i, 0)),       # target tile
        ],
        out_specs=[
            pl.BlockSpec((tile_n, v_pad), lambda i: (i, 0)),   # true_dist tile
            pl.BlockSpec((8, 128), lambda i: (i, 0)),          # per-tile (8,128) KL partial
        ],
        out_shape=[
            jax.ShapeDtypeStruct((N, v_pad), x.dtype),
            jax.ShapeDtypeStruct((num_tiles * 8, 128), jnp.float32),
        ],
        compiler_params=pltpu.CompilerParams(
            dimension_semantics=("parallel",),                 # no resident state -> shardable
            vmem_limit_bytes=vmem_limit),
    )(x, target2d)

    loss = jnp.sum(loss_parts, dtype=jnp.float32)              # tiny final reduce in XLA
    if v_pad != V:
        true_dist = true_dist[:, :V]
    return loss, true_dist


def _reference(x, target, *, size, padding_idx, smoothing):
    """Plain-JAX reference replicating the PyTorch forward exactly."""
    confidence = 1.0 - smoothing
    smooth_val = smoothing / (size - 2)
    N, V = x.shape
    col = jnp.arange(V)[None, :]
    tgt = target[:, None]
    td = jnp.where(col == tgt, confidence, smooth_val)
    td = jnp.where(col == padding_idx, 0.0, td)
    td = jnp.where(tgt == padding_idx, 0.0, td)
    kl = jnp.where(td > 0, td * (jnp.log(jnp.where(td > 0, td, 1.0)) - x), 0.0)
    return jnp.sum(kl), td


if __name__ == "__main__":
    PADDING_IDX = 0
    SMOOTHING = 0.1

    key = jax.random.PRNGKey(0)
    k1, k2, k3, k4 = jax.random.split(key, 4)

    # Case 1: lane-aligned vocab, rows a multiple of 8 (single large tile).
    SIZE1, N1 = 256, 24
    x1 = jax.nn.log_softmax(jax.random.normal(k1, (N1, SIZE1), dtype=jnp.float32), axis=-1)
    t1 = jax.random.randint(k2, (N1,), 0, SIZE1, dtype=jnp.int32)
    t1 = t1.at[3].set(PADDING_IDX).at[9].set(PADDING_IDX)   # exercise row-zeroing path
    loss1, td1 = label_smoothing_loss(
        x1, t1, size=SIZE1, padding_idx=PADDING_IDX, smoothing=SMOOTHING)
    loss1 = jax.block_until_ready(loss1)
    td1 = jax.block_until_ready(td1)
    rl1, rtd1 = _reference(x1, t1, size=SIZE1, padding_idx=PADDING_IDX, smoothing=SMOOTHING)
    assert jnp.allclose(td1, rtd1, atol=1e-6), "case1 true_dist mismatch"
    assert jnp.allclose(loss1, rl1, rtol=1e-4, atol=1e-3), "case1 loss mismatch"

    # Case 2: non-multiple-of-128 vocab (wrapper pads + kernel masks) and a
    # ragged last row tile (tile_n forced to 8, N=20 -> 3 tiles, last partial).
    SIZE2, N2 = 200, 20
    x2 = jax.nn.log_softmax(jax.random.normal(k3, (N2, SIZE2), dtype=jnp.float32), axis=-1)
    t2 = jax.random.randint(k4, (N2,), 0, SIZE2, dtype=jnp.int32)
    t2 = t2.at[0].set(PADDING_IDX).at[7].set(PADDING_IDX)
    loss2, td2 = label_smoothing_loss(
        x2, t2, size=SIZE2, padding_idx=PADDING_IDX, smoothing=SMOOTHING, tile_n=8)
    loss2 = jax.block_until_ready(loss2)
    td2 = jax.block_until_ready(td2)
    rl2, rtd2 = _reference(x2, t2, size=SIZE2, padding_idx=PADDING_IDX, smoothing=SMOOTHING)
    assert jnp.allclose(td2, rtd2, atol=1e-6), "case2 true_dist mismatch"
    assert jnp.allclose(loss2, rl2, rtol=1e-4, atol=1e-3), "case2 loss mismatch"

    print("KERNEL_OK")
</pallas_src>

<mosaic_0001>
module attributes {stable_mosaic.version = 11 : i64} {
  func.func @_label_smoothing_kernel(%arg0: i32, %arg1: memref<24x256xf32, #tpu.memory_space<vmem>>, %arg2: memref<24x1xi32, #tpu.memory_space<vmem>>, %arg3: memref<24x256xf32, #tpu.memory_space<vmem>>, %arg4: memref<8x128xf32, #tpu.memory_space<vmem>>) attributes {dimension_semantics = [#tpu.dimension_semantics<parallel>], iteration_bounds = array<i64: 1>, scalar_prefetch = 0 : i64, scratch_operands = 0 : i64, tpu.core_type = #tpu.core_type<tc>, window_params = [{transform_indices = @transform_0, window_bounds = array<i64: 24, 256>}, {transform_indices = @transform_1, window_bounds = array<i64: 24, 1>}, {transform_indices = @transform_2, window_bounds = array<i64: 24, 256>}, {transform_indices = @transform_3, window_bounds = array<i64: 8, 128>}]} {
    %c0 = arith.constant 0 : index
    %c0_0 = arith.constant 0 : index
    %0 = vector.load %arg1[%c0, %c0_0] : memref<24x256xf32, #tpu.memory_space<vmem>>, vector<24x256xf32>
    %c0_1 = arith.constant 0 : index
    %c0_2 = arith.constant 0 : index
    %1 = vector.load %arg2[%c0_1, %c0_2] : memref<24x1xi32, #tpu.memory_space<vmem>>, vector<24x1xi32>
    %2 = tpu.iota {dimensions = array<i32: 1>} : vector<24x256xi32>
    %3 = vector.broadcast %1 : vector<24x1xi32> to vector<24x256xi32>
    %4 = arith.cmpi eq, %2, %3 : vector<24x256xi32>
    %cst = arith.constant 0.899999976 : f32
    %cst_3 = arith.constant 3.93700786E-4 : f32
    %5 = vector.broadcast %cst : f32 to vector<24x256xf32>
    %6 = vector.broadcast %cst_3 : f32 to vector<24x256xf32>
    %7 = arith.select %4, %5, %6 : vector<24x256xi1>, vector<24x256xf32>
    %cst_4 = arith.constant -0.105360515 : f32
    %cst_5 = arith.constant -7.83991957 : f32
    %8 = vector.broadcast %cst_4 : f32 to vector<24x256xf32>
    %9 = vector.broadcast %cst_5 : f32 to vector<24x256xf32>
    %10 = arith.select %4, %8, %9 : vector<24x256xi1>, vector<24x256xf32>
    %c0_i32 = arith.constant 0 : i32
    %11 = vector.broadcast %c0_i32 : i32 to vector<24x256xi32>
    %12 = arith.cmpi ne, %2, %11 : vector<24x256xi32>
    %c0_i32_6 = arith.constant 0 : i32
    %13 = vector.broadcast %c0_i32_6 : i32 to vector<24x1xi32>
    %14 = arith.cmpi ne, %1, %13 : vector<24x1xi32>
    %15 = vector.broadcast %14 : vector<24x1xi1> to vector<24x256xi1>
    %16 = arith.andi %12, %15 : vector<24x256xi1>
    %cst_7 = arith.constant 0.000000e+00 : f32
    %17 = vector.broadcast %cst_7 : f32 to vector<24x256xf32>
    %18 = arith.select %16, %7, %17 : vector<24x256xi1>, vector<24x256xf32>
    %c0_8 = arith.constant 0 : index
    %c0_9 = arith.constant 0 : index
    %19 = vector.load %arg3[%c0_8, %c0_9] : memref<24x256xf32, #tpu.memory_space<vmem>>, vector<24x256xf32>
    tpu.vector_store %arg3[%c0_8, %c0_9], %18 {strides = array<i32>} : memref<24x256xf32, #tpu.memory_space<vmem>>, vector<24x256xf32>,
    %cst_10 = arith.constant 0.000000e+00 : f32
    %20 = vector.broadcast %cst_10 : f32 to vector<24x256xf32>
    %21 = arith.cmpf ogt, %18, %20 : vector<24x256xf32>
    %22 = arith.subf %10, %0 : vector<24x256xf32>
    %23 = arith.mulf %18, %22 : vector<24x256xf32>
    %cst_11 = arith.constant 0.000000e+00 : f32
    %24 = vector.broadcast %cst_11 : f32 to vector<24x256xf32>
    %25 = arith.select %21, %23, %24 : vector<24x256xi1>, vector<24x256xf32>
    %26 = vector.shape_cast %25 : vector<24x256xf32> to vector<3x8x256xf32>
    %cst_12 = arith.constant dense<0.000000e+00> : vector<8x256xf32>
    %27 = vector.multi_reduction <add>, %26, %cst_12 [0] : vector<3x8x256xf32> to vector<8x256xf32>
    %28 = vector.extract_strided_slice %27 {offsets = [0, 0], sizes = [8, 128], strides = [1, 1]} : vector<8x256xf32> to vector<8x128xf32>
    %29 = vector.extract_strided_slice %27 {offsets = [0, 128], sizes = [8, 128], strides = [1, 1]} : vector<8x256xf32> to vector<8x128xf32>
    %30 = arith.addf %28, %29 : vector<8x128xf32>
    %c0_13 = arith.constant 0 : index
    %c0_14 = arith.constant 0 : index
    %31 = vector.load %arg4[%c0_13, %c0_14] : memref<8x128xf32, #tpu.memory_space<vmem>>, vector<8x128xf32>
    tpu.vector_store %arg4[%c0_13, %c0_14], %30 {strides = array<i32>} : memref<8x128xf32, #tpu.memory_space<vmem>>, vector<8x128xf32>,
    return
  }
  func.func @transform_0(%arg0: i32) -> (i32, i32) {
    %c0_i32 = arith.constant 0 : i32
    %c0_i32_0 = arith.constant 0 : i32
    return %arg0, %c0_i32 : i32, i32
  }
  func.func @transform_1(%arg0: i32) -> (i32, i32) {
    %c0_i32 = arith.constant 0 : i32
    %c0_i32_0 = arith.constant 0 : i32
    return %arg0, %c0_i32 : i32, i32
  }
  func.func @transform_2(%arg0: i32) -> (i32, i32) {
    %c0_i32 = arith.constant 0 : i32
    %c0_i32_0 = arith.constant 0 : i32
    return %arg0, %c0_i32 : i32, i32
  }
  func.func @transform_3(%arg0: i32) -> (i32, i32) {
    %c0_i32 = arith.constant 0 : i32
    %c0_i32_0 = arith.constant 0 : i32
    return %arg0, %c0_i32 : i32, i32
  }
}

</mosaic_0001>

<bundles_post_ra>
// kernel: tpu_custom_call.1
= control target key start
LH: loop header
LB: loop body
LE: loop exit
PB: predicated region body
PF: predicated region fallthrough
CT: control target
= control target key end

     0   :  { %9 = vsyncpa [#allocation3], 0  ;;  %s349_s0 = inlined_call_operand.hbm [shape: f32[24,256], index: 0, kind: input, shape index: {}]   ;;  %s350_s1 = inlined_call_operand.vmem [shape: s32[24,1], index: 1, kind: input, shape index: {}]   ;;  %s351_s2 = inlined_call_operand.hbm [shape: f32[24,256], index: 2, kind: output, shape index: {0}]   ;;  %s352_s3 = inlined_call_operand.hbm [shape: f32[8,128], index: 3, kind: output, shape index: {1}]  }
   0x1   :  { %10 = vsyncpa [#allocation4], 0 }
   0x2   :  { %11 = vsyncpa [#allocation7], 0  ;;  %s249_s12 = smov [#allocation2]   ;;  %s177_s16 = scalar_lea.hbm %s349_s0, 768 }
   0x3   :  { %s17_s13 = sshll.u32 %s249_s12, 4  ;;  %p178_p0 = scmp.ne.s32.totalorder %s349_s0, %s177_s16  ;;  %s18_s13 = int_to_ptr.vmem [resolvable:$true] %s17_s13 }
   0x4   :  { %p181_p1 = scmp.lt.u32.totalorder %s177_s16, %s349_s0 }
   0x6   :  { %p183_p2 = pnand %p181_p1, %p178_p0 }
   0x8   :  { %186 = shalt.err (!%p183_p2)
}
   0x9   :  { %s187_s21 = scalar_lea.vmem %s18_s13, 768  ;;  %p192_p4 = scmp.lt.s32.totalorder %s18_s13, %s18_s13 }
   0xa   :  { %p188_p3 = scmp.ne.s32.totalorder %s18_s13, %s187_s21  ;;  %p193_p5 = scmp.lt.s32.totalorder %s187_s21, %s187_s21 }
   0xc   :  { %p194_p6 = por %p193_p5, %p192_p4 }
   0xe   :  { %p195_p7 = pnand %p194_p6, %p188_p3 }
  0x10   :  { %198 = shalt.err (!%p195_p7)
}
  0x11   :  { %s250_s22 = smov 256   ;;  %s251_s23 = smov 16  }
  0x12   :  { %23 = dma.hbm_to_vmem [thread:$0]  %s349_s0, 768, %s18_s13, [#allocation3], %s250_s22, %s250_s22, %s251_s23  }
  0x13   :  { %243 = dma.done.wait [#allocation3], 768  }
  0x14   :  { %244 = vsyncadd [#allocation3], 4294966528  ;;  %v252_v0 = vmov 0   ;;  %v35_v1 = vld [vmem:[%s350_s1] sm:$0xff]  ;;  %v36_v2 = vld [vmem:[%s350_s1 + $0x8] sm:$0xff]  ;;  %v38_v7 = vlaneseq  ;;  %s255_s0 = smov [#allocation5]  }
  0x15   :  { %175 = vset.pattern.permute.xlu0 %v252_v0  ;;  %176 = vset.pattern.permute.xlu1 %v252_v0  ;;  %vm70_vm0 = vcmp.ne.s32.totalorder %v35_v1, 0  ;;  %vm71_vm1 = vcmp.ne.s32.totalorder %v36_v2, 0  ;;  %v37_v4 = vld [vmem:[%s350_s1 + $0x10] sm:$0xff]  ;;  %v253_v11 = vmov 0.0003937008   ;;  %v29_v14 = vld [vmem:[#allocation2] sm:$0xff] }
  0x16   :  { %42 = vperm.xlu0 %175, %v35_v1   ;;  %v73_v3 = vsel %vm70_vm0, 1, %v252_v0  ;;  %v74_v5 = vsel %vm71_vm1, 1, %v252_v0  ;;  %vm72_vm2 = vcmp.ne.s32.totalorder %v37_v4, 0  ;;  %v301_v8 = vand.u32 127, %v38_v7  ;;  %v30_v18 = vld [vmem:[#allocation2 + $0x8] sm:$0xff]  ;;  %v31_v23 = vld [vmem:[#allocation2 + $0x10] sm:$0xff] }
  0x17   :  { %77 = vperm.xlu1 %176, %v73_v3   ;;  %v75_v6 = vsel %vm72_vm2, 1, %v252_v0  ;;  %v254_v15 = vmov -7.8399196   ;;  %v32_v24 = vld [vmem:[#allocation2 + $0x18] sm:$0xff]  ;;  %v33_v37 = vld [vmem:[#allocation2 + $0x20] sm:$0xff]  ;;  %v34_v40 = vld [vmem:[#allocation2 + $0x28] sm:$0xff] }
  0x18   :  { %v40_v9 = vadd.s32 128, %v301_v8  ;;  %vm68_vm5 = vcmp.ne.s32.totalorder %v301_v8, 0  ;;  %s141_s1 = sshll.u32 %s255_s0, 4  ;;  %s142_s1 = int_to_ptr.vmem [resolvable:$true] %s141_s1 }
  0x19   :  { %s199_s5 = scalar_lea.vmem %s142_s1, 768  ;;  %p204_p9 = scmp.lt.s32.totalorder %s142_s1, %s142_s1 }
  0x1a   :  { %45 = vperm.xlu0 %175, %v36_v2   ;;  %p200_p8 = scmp.ne.s32.totalorder %s142_s1, %s199_s5  ;;  %p205_p10 = scmp.lt.s32.totalorder %s199_s5, %s199_s5 }
  0x1b   :  { %80 = vperm.xlu1 %176, %v74_v5  }
  0x1c   :  { %p206_p11 = por %p205_p10, %p204_p9 }
  0x1e   :  { %48 = vperm.xlu0 %175, %v37_v4   ;;  %p207_p12 = pnand %p206_p11, %p200_p8 }
  0x1f   :  { %83 = vperm.xlu1 %176, %v75_v6  }
  0x95   :  { %v43_v10 = vpop.permute.xlu0 %42 }
  0x96   :  { %vm50_vm3 = vcmp.eq.s32.totalorder %v301_v8, %v43_v10  ;;  %vm51_vm4 = vcmp.eq.s32.totalorder %v40_v9, %v43_v10  ;;  %v78_v13 = vpop.permute.xlu1 %77 }
  0x97   :  { %v56_v12 = vsel %vm50_vm3, 0.9, %v253_v11  ;;  %v62_v16 = vsel %vm50_vm3, -0.105360515, %v254_v15  ;;  %v57_v17 = vsel %vm51_vm4, 0.9, %v253_v11 }
  0x98   :  { %vm85_vm6 = vcmp.eq.s32.totalorder %v78_v13, 1  ;;  %v63_v19 = vsel %vm51_vm4, -0.105360515, %v254_v15  ;;  %v112_v25 = vsub.f32 %v62_v16, %v29_v14 }
  0x99   :  { %vm88_vm7 = vmand %vm68_vm5, %vm85_vm6  ;;  %v95_v20 = vsel %vm85_vm6, %v57_v17, 0.0  ;;  %v46_v21 = vpop.permute.xlu0 %45  ;;  %v113_v27 = vsub.f32 %v63_v19, %v30_v18 }
  0x9a   :  { %v94_v22 = vsel %vm88_vm7, %v56_v12, 0.0  ;;  %101 = vst [vmem:[#allocation5 + $0x8] sm:$0xff] %v95_v20  ;;  %vm52_vm8 = vcmp.eq.s32.totalorder %v301_v8, %v46_v21  ;;  %vm53_vm9 = vcmp.eq.s32.totalorder %v40_v9, %v46_v21  ;;  %v81_v26 = vpop.permute.xlu1 %80  ;;  %vm107_vm0 = vcmp.gt.f32.partialorder %v95_v20, 0.0 }
  0x9b   :  { %100 = vst [vmem:[#allocation5] sm:$0xff] %v94_v22  ;;  %v64_v28 = vsel %vm52_vm8, -0.105360515, %v254_v15  ;;  %v65_v29 = vsel %vm53_vm9, -0.105360515, %v254_v15  ;;  %vm86_vm10 = vcmp.eq.s32.totalorder %v81_v26, 1  ;;  %v119_v42 = vmul.f32 %v113_v27, %v95_v20 }
  0x9c   :  { %v58_v30 = vsel %vm52_vm8, 0.9, %v253_v11  ;;  %v114_v31 = vsub.f32 %v64_v28, %v31_v23  ;;  %v115_v32 = vsub.f32 %v65_v29, %v32_v24  ;;  %v59_v33 = vsel %vm53_vm9, 0.9, %v253_v11  ;;  %vm90_vm11 = vmand %vm68_vm5, %vm86_vm10 }
  0x9d   :  { %v49_v34 = vpop.permute.xlu0 %48  ;;  %v96_v35 = vsel %vm90_vm11, %v58_v30, 0.0  ;;  %v97_v36 = vsel %vm86_vm10, %v59_v33, 0.0  ;;  %v118_v45 = vmul.f32 %v112_v25, %v94_v22  ;;  %vm106_vm1 = vcmp.gt.f32.partialorder %v94_v22, 0.0 }
  0x9e   :  { %vm54_vm12 = vcmp.eq.s32.totalorder %v301_v8, %v49_v34  ;;  %vm55_vm13 = vcmp.eq.s32.totalorder %v40_v9, %v49_v34  ;;  %102 = vst [vmem:[#allocation5 + $0x10] sm:$0xff] %v96_v35  ;;  %103 = vst [vmem:[#allocation5 + $0x18] sm:$0xff] %v97_v36  ;;  %vm109_vm14 = vcmp.gt.f32.partialorder %v97_v36, 0.0  ;;  %v120_v38 = vmul.f32 %v114_v31, %v96_v35  ;;  %v84_v41 = vpop.permute.xlu1 %83 }
  0x9f   :  { %v121_v39 = vmul.f32 %v115_v32, %v97_v36  ;;  %vm108_vm15 = vcmp.gt.f32.partialorder %v96_v35, 0.0  ;;  %v61_v43 = vsel %vm55_vm13, 0.9, %v253_v11  ;;  %v66_v44 = vsel %vm54_vm12, -0.105360515, %v254_v15 }
  0xa0   :  { %v67_v46 = vsel %vm55_vm13, -0.105360515, %v254_v15  ;;  %v116_v47 = vsub.f32 %v66_v44, %v33_v37  ;;  %vm87_vm2 = vcmp.eq.s32.totalorder %v84_v41, 1  ;;  %v126_v50 = vsel %vm108_vm15, %v120_v38, 0.0 }
  0xa1   :  { %v127_v48 = vsel %vm109_vm14, %v121_v39, 0.0  ;;  %v117_v49 = vsub.f32 %v67_v46, %v34_v40  ;;  %v60_v51 = vsel %vm54_vm12, 0.9, %v253_v11  ;;  %vm92_vm3 = vmand %vm68_vm5, %vm87_vm2  ;;  %v99_v52 = vsel %vm87_vm2, %v61_v43, 0.0 }
  0xa2   :  { %v125_v53 = vsel %vm107_vm0, %v119_v42, 0.0  ;;  %v98_v54 = vsel %vm92_vm3, %v60_v51, 0.0  ;;  %105 = vst [vmem:[#allocation5 + $0x28] sm:$0xff] %v99_v52  ;;  %vm111_vm4 = vcmp.gt.f32.partialorder %v99_v52, 0.0  ;;  %v124_v56 = vsel %vm106_vm1, %v118_v45, 0.0 }
  0xa3   :  { %v123_v55 = vmul.f32 %v117_v49, %v99_v52  ;;  %v132_v57 = vadd.f32 %v127_v48, %v125_v53  ;;  %104 = vst [vmem:[#allocation5 + $0x20] sm:$0xff] %v98_v54  ;;  %vm110_vm6 = vcmp.gt.f32.partialorder %v98_v54, 0.0  ;;  %v122_v58 = vmul.f32 %v116_v47, %v98_v54 }
  0xa4   :  { %v130_v59 = vadd.f32 %v126_v50, %v124_v56 }
  0xa5   :  { %v129_v60 = vsel %vm111_vm4, %v123_v55, 0.0 }
  0xa6   :  { %210 = shalt.err (!%p207_p12)
}
  0xa7   :  { %s211_s8 = scalar_lea.hbm %s351_s2, 768 }
  0xa8   :  { %p212_p13 = scmp.ne.s32.totalorder %s351_s2, %s211_s8  ;;  %p215_p0 = scmp.lt.u32.totalorder %s211_s8, %s351_s2 }
  0xaa   :  { %p217_p1 = pnand %p215_p0, %p212_p13 }
  0xac   :  { %220 = shalt.err (!%p217_p1)
}
  0xad   :  { %147 = dma.vmem_to_hbm [thread:$0]  %s142_s1, 768, %s351_s2, [#allocation4], %s250_s22, %s250_s22, %s251_s23   ;;  %v128_v61 = vsel %vm110_vm6, %v122_v58, 0.0  ;;  %v133_v62 = vadd.f32 %v132_v57, %v129_v60 }
  0xae   :  { %s256_s15 = smov [#allocation6]   ;;  %v131_v63 = vadd.f32 %v130_v59, %v128_v61 }
  0xaf   :  { %s154_s16 = sshll.u32 %s256_s15, 4  ;;  %s155_s16 = int_to_ptr.vmem [resolvable:$true] %s154_s16 }
  0xb0   :  { %v134_v0 = vadd.f32 %v133_v62, %v131_v63  ;;  %s221_s17 = scalar_lea.vmem %s155_s16, 128  ;;  %p226_p3 = scmp.lt.s32.totalorder %s155_s16, %s155_s16 }
  0xb1   :  { %p222_p2 = scmp.ne.s32.totalorder %s155_s16, %s221_s17  ;;  %p227_p4 = scmp.lt.s32.totalorder %s221_s17, %s221_s17 }
  0xb2   :  { %135 = vst [vmem:[#allocation6] sm:$0xff] %v134_v0 }
  0xb3   :  { %p228_p5 = por %p227_p4, %p226_p3 }
  0xb5   :  { %p229_p6 = pnand %p228_p5, %p222_p2 }
  0xb7   :  { %232 = shalt.err (!%p229_p6)
}
  0xb8   :  { %s233_s2 = scalar_lea.hbm %s352_s3, 128 }
  0xb9   :  { %p234_p7 = scmp.ne.s32.totalorder %s352_s3, %s233_s2  ;;  %p237_p8 = scmp.lt.u32.totalorder %s233_s2, %s352_s3 }
  0xbb   :  { %p239_p9 = pnand %p237_p8, %p234_p7 }
  0xbd   :  { %242 = shalt.err (!%p239_p9)
}
  0xbe   :  { %157 = dma.vmem_to_hbm [thread:$0]  %s155_s16, 128, %s352_s3, [#allocation7]  }
  0xbf   :  { %245 = dma.done.wait [#allocation4], 768  }
  0xc0   :  { %246 = vsyncadd [#allocation4], 4294966528 }
  0xc1   :  { %247 = dma.done.wait [#allocation7], 128  }
  0xc2   :  { %248 = vsyncadd [#allocation7], 4294967168 }
  0xc3   :  { %164 = vsyncpa [#allocation3], 1 }
  0xc4   :  { %165 = vsyncpa [#allocation4], 1 }
  0xc5   :  { %166 = vsyncpa [#allocation7], 1 }

</bundles_post_ra>
